<compile_context>
chip_gen: v7x
topology: tpu7x:2x2x1
jax: 0.10.0
libtpu: 0.0.40
codegen_flags: <defaults>
</compile_context>

<pallas_src>
import functools
import itertools

import jax
import jax.numpy as jnp
from jax import lax
from jax.experimental import pallas as pl
from jax.experimental.pallas import tpu as pltpu

# ----------------------------- configuration -------------------------------
N_CLASSES = 10            # stand-in for config.n_classification
GROWTH = 48               # densenet161 growth rate
BN_SIZE = 4
BLOCK_CONFIG = (6, 12, 36, 24)
NUM_INIT_FEATURES = 96
BN_EPS = 1e-5

_VMEM = pltpu.MemorySpace.VMEM
_VMEM_LIMIT = 32 * 1024 * 1024


def _round_up(x, m):
    return (x + m - 1) // m * m


def _row_tile(m, cap):
    """Row-tile for an (m, C) slab: full m if small, else the largest
    multiple-of-8 divisor <= cap, else pad up to a multiple of cap."""
    if m <= cap:
        return m, m
    for d in range(cap, 7, -8):
        if m % d == 0:
            return d, m
    return cap, _round_up(m, cap)


# ----------------------------- Pallas kernels ------------------------------
def _matmul_kernel(a_ref, b_ref, o_ref):
    """bf16 x bf16 -> bf16 (f32 MXU accumulation); full-K contraction."""
    o_ref[...] = jnp.dot(a_ref[...], b_ref[...],
                         preferred_element_type=jnp.float32).astype(o_ref.dtype)


def _matmul_bn_relu_kernel(a_ref, s_ref, t_ref, b_ref, o_ref):
    """Fused BatchNorm-affine + ReLU + matmul (the 1x1-conv path).

    a_ref is the raw activation tile; s/t are per-channel scale/shift aligned
    with the K axis.  relu(a*s + t) is applied in f32 on the VPU, cast to bf16
    and fed straight into the MXU."""
    a = jnp.maximum(a_ref[...].astype(jnp.float32) * s_ref[...] + t_ref[...],
                    0.0).astype(jnp.bfloat16)
    o_ref[...] = jnp.dot(a, b_ref[...],
                         preferred_element_type=jnp.float32).astype(o_ref.dtype)


def _bn_stats_kernel(x_ref, sum_ref, sq_ref):
    """Row-tiled per-channel sum / sum-of-squares (f32 accumulation)."""
    @pl.when(pl.program_id(0) == 0)
    def _():
        sum_ref[...] = jnp.zeros_like(sum_ref)
        sq_ref[...] = jnp.zeros_like(sq_ref)

    x = x_ref[...].astype(jnp.float32)
    sum_ref[...] += jnp.sum(x, axis=0, keepdims=True)
    sq_ref[...] += jnp.sum(x * x, axis=0, keepdims=True)


def _head_kernel(x_ref, w_ref, b_ref, o_ref):
    """Linear(2208 -> n_classes) + Softmax(dim=1)."""
    z = jnp.dot(x_ref[...], w_ref[...],
                preferred_element_type=jnp.float32) + b_ref[...]
    z = z - jnp.max(z, axis=-1, keepdims=True)
    e = jnp.exp(z)
    o_ref[...] = e * pl.reciprocal(jnp.sum(e, axis=-1, keepdims=True),
                                   approx=True)


# ------------------------ cached pallas_call builders ----------------------
@functools.lru_cache(maxsize=None)
def _matmul_call(Mp, K, Cout, tm, tn):
    return pl.pallas_call(
        _matmul_kernel,
        out_shape=jax.ShapeDtypeStruct((Mp, Cout), jnp.bfloat16),
        grid=(Mp // tm, Cout // tn),
        in_specs=[pl.BlockSpec((tm, K), lambda i, j: (i, 0)),
                  pl.BlockSpec((K, tn), lambda i, j: (0, j))],
        out_specs=pl.BlockSpec((tm, tn), lambda i, j: (i, j)),
        compiler_params=pltpu.CompilerParams(
            dimension_semantics=("parallel", "parallel"),
            vmem_limit_bytes=_VMEM_LIMIT),
    )


@functools.lru_cache(maxsize=None)
def _matmul_bn_relu_call(Mp, K, Cout, tm, tn):
    return pl.pallas_call(
        _matmul_bn_relu_kernel,
        out_shape=jax.ShapeDtypeStruct((Mp, Cout), jnp.bfloat16),
        grid=(Mp // tm, Cout // tn),
        in_specs=[pl.BlockSpec((tm, K), lambda i, j: (i, 0)),
                  pl.BlockSpec((1, K), lambda i, j: (0, 0)),
                  pl.BlockSpec((1, K), lambda i, j: (0, 0)),
                  pl.BlockSpec((K, tn), lambda i, j: (0, j))],
        out_specs=pl.BlockSpec((tm, tn), lambda i, j: (i, j)),
        compiler_params=pltpu.CompilerParams(
            dimension_semantics=("parallel", "parallel"),
            vmem_limit_bytes=_VMEM_LIMIT),
    )


@functools.lru_cache(maxsize=None)
def _bn_stats_call(Mp, C, tr):
    return pl.pallas_call(
        _bn_stats_kernel,
        out_shape=[jax.ShapeDtypeStruct((1, C), jnp.float32),
                   jax.ShapeDtypeStruct((1, C), jnp.float32)],
        grid=(Mp // tr,),
        in_specs=[pl.BlockSpec((tr, C), lambda r: (r, 0))],
        out_specs=[pl.BlockSpec((1, C), lambda r: (0, 0)),
                   pl.BlockSpec((1, C), lambda r: (0, 0))],
        compiler_params=pltpu.CompilerParams(
            dimension_semantics=("arbitrary",),
            vmem_limit_bytes=_VMEM_LIMIT),
    )


@functools.lru_cache(maxsize=None)
def _head_call(M, K, N):
    return pl.pallas_call(
        _head_kernel,
        out_shape=jax.ShapeDtypeStruct((M, N), jnp.float32),
        in_specs=[pl.BlockSpec(memory_space=_VMEM)] * 3,
        out_specs=pl.BlockSpec(memory_space=_VMEM),
        compiler_params=pltpu.CompilerParams(vmem_limit_bytes=_VMEM_LIMIT),
    )


# --------------------------- matmul tile selection --------------------------
def _matmul_tiles(M, Cout):
    tm, Mp = _row_tile(M, 512)
    if Mp < 8:                                 # keep >=8 sublanes for the MXU
        tm, Mp = 8, 8
    if Cout <= 512:
        tn = Cout                              # lane-exact output, no slicing
    else:
        tn = next((c for c in (512, 384, 256, 128) if Cout % c == 0), Cout)
    # v7x has 2 TensorCores: make sure non-trivial matmuls expose >=2 parallel
    # output blocks (costs one extra 0.35us grid step on v5e/v6e, negligible).
    if Mp // tm == 1 and Cout // tn == 1 and M >= 16 and (M // 2) % 8 == 0:
        tm = M // 2
    return tm, Mp, tn


def _mm(a, w):
    """a: (M, K) bf16, w: (K, Cout) bf16 -> (M, Cout) bf16."""
    M, K = a.shape
    Cout = w.shape[1]
    tm, Mp, tn = _matmul_tiles(M, Cout)
    if Mp != M:
        a = jnp.pad(a, ((0, Mp - M), (0, 0)))
    out = _matmul_call(Mp, K, Cout, tm, tn)(a, w)
    return out if Mp == M else out[:M]


def _mm_bn_relu(a, scale, shift, w):
    """relu(a * scale + shift) @ w with the affine fused into the kernel."""
    M, K = a.shape
    Cout = w.shape[1]
    tm, Mp, tn = _matmul_tiles(M, Cout)
    if Mp != M:
        a = jnp.pad(a, ((0, Mp - M), (0, 0)))
    out = _matmul_bn_relu_call(Mp, K, Cout, tm, tn)(a, scale, shift, w)
    return out if Mp == M else out[:M]


# ------------------------------ op wrappers --------------------------------
# Each wrapper is jitted so the XLA glue (reshape / pad / im2col slices /
# pooling trees) fuses around the embedded pallas_call; the jit cache is keyed
# by the (static) layer shapes, exactly like the old per-shape builders.

@jax.jit
def _bn_scale_shift(x, gamma, beta, inv_count):
    """Training-mode BatchNorm batch statistics -> per-channel scale/shift.

    Pallas row-tiled stats reduction + tiny XLA finalize (mean / rsqrt)."""
    N, H, W, C = x.shape
    M = N * H * W
    a = x.reshape(M, C)
    tr, Mp = _row_tile(M, 1024)
    if Mp != M:
        a = jnp.pad(a, ((0, Mp - M), (0, 0)))       # zero rows don't bias sums
    s, q = _bn_stats_call(Mp, C, tr)(a)
    mean = s * inv_count
    var = jnp.maximum(q * inv_count - mean * mean, 0.0)
    scale = gamma * lax.rsqrt(var + BN_EPS)
    shift = beta - mean * scale
    return scale, shift


@jax.jit
def _conv1x1_bn_relu(x, scale, shift, w):
    """BN-affine + ReLU + Conv2d 1x1 (bias=False), fully fused in one kernel."""
    N, H, W, C = x.shape
    out = _mm_bn_relu(x.reshape(N * H * W, C), scale, shift, w)
    return out.reshape(N, H, W, w.shape[1])


@functools.partial(jax.jit,
                   static_argnames=("k", "stride", "padding", "kpad",
                                    "apply_affine"))
def _conv_im2col(x, scale, shift, w, *, k, stride, padding, kpad, apply_affine):
    """(optional BN-affine+ReLU) + Conv2d kxk via bf16 im2col + Pallas matmul.

    The affine+ReLU+pad+tap-gather is one XLA fusion reading x once and writing
    the bf16 im2col operand once (no separate normalized slab).
    TODO(synk): fuse the kxk tap gather into the matmul K loop (shifted-window
    index-mapped BlockSpecs / manual DMA) to avoid materializing the
    k*k-amplified im2col slab through HBM at all."""
    N, H, W, C = x.shape
    if apply_affine:
        a = jnp.maximum(x.astype(jnp.float32) * scale + shift,
                        0.0).astype(jnp.bfloat16)
    else:
        a = x.astype(jnp.bfloat16)
    Ho = (H + 2 * padding - k) // stride + 1
    Wo = (W + 2 * padding - k) // stride + 1
    ap = (jnp.pad(a, ((0, 0), (padding, padding), (padding, padding), (0, 0)))
          if padding else a)
    cols = []
    for i in range(k):
        for j in range(k):
            cols.append(lax.slice(
                ap, (0, i, j, 0),
                (N, i + (Ho - 1) * stride + 1, j + (Wo - 1) * stride + 1, C),
                (1, stride, stride, 1)))
    a2 = jnp.stack(cols, axis=3).reshape(N * Ho * Wo, k * k * C)
    if kpad != k * k * C:
        a2 = jnp.pad(a2, ((0, 0), (0, kpad - k * k * C)))
    out = _mm(a2, w)
    return out.reshape(N, Ho, Wo, w.shape[1])


@jax.jit
def _maxpool3x3s2_affine_relu(x, scale, shift):
    """BN-affine + ReLU + MaxPool2d(3, stride=2, padding=1), one XLA fusion."""
    N, H, W, C = x.shape
    a = jnp.maximum(x.astype(jnp.float32) * scale + shift, 0.0)
    Ho = (H + 2 - 3) // 2 + 1
    Wo = (W + 2 - 3) // 2 + 1
    neg = jnp.finfo(jnp.float32).min
    ap = jnp.pad(a, ((0, 0), (1, 1), (1, 1), (0, 0)), constant_values=neg)
    out = None
    for i in range(3):
        for j in range(3):
            s = lax.slice(ap, (0, i, j, 0),
                          (N, i + (Ho - 1) * 2 + 1, j + (Wo - 1) * 2 + 1, C),
                          (1, 2, 2, 1))
            out = s if out is None else jnp.maximum(out, s)
    return out.astype(jnp.bfloat16)


@jax.jit
def _avgpool2x2(x):
    """AvgPool2d(kernel=2, stride=2) (H, W even), f32 accumulation."""
    x32 = x.astype(jnp.float32)
    s = (x32[:, 0::2, 0::2, :] + x32[:, 1::2, 0::2, :]
         + x32[:, 0::2, 1::2, :] + x32[:, 1::2, 1::2, :])
    return (0.25 * s).astype(jnp.bfloat16)


@jax.jit
def _global_pool_affine_relu(x, scale, shift):
    """BN-affine + ReLU + adaptive_avg_pool2d((1,1)) + flatten -> (N, C) f32."""
    a = jnp.maximum(x.astype(jnp.float32) * scale + shift, 0.0)
    return jnp.mean(a, axis=(1, 2))


@jax.jit
def _classifier_softmax(pooled, wT, b):
    """Linear(C -> n_classes, bias) + Softmax(dim=1)."""
    N, C = pooled.shape
    Mp = max(_round_up(N, 8), 8)
    x = pooled.astype(jnp.bfloat16)
    if Mp != N:
        x = jnp.pad(x, ((0, Mp - N), (0, 0)))
    out = _head_call(Mp, C, wT.shape[1])(x, wT, b)
    return out[:N]


# ----------------------------- model definition ----------------------------
def build_params(key):
    """Deterministic DenseNet-161 parameters.  Conv weights are generated in
    PyTorch OIHW with kaiming-style std, then pre-reshaped/transposed to
    (k*k*Cin, Cout) bf16 matmul matrices (K rounded up to a multiple of 8);
    BN gamma/beta are (1, C) f32."""
    counter = itertools.count()

    def rnd(shape, std):
        return (jax.random.normal(jax.random.fold_in(key, next(counter)),
                                  shape, jnp.float32) * std)

    def conv_p(cout, cin, k):
        fan_in = cin * k * k
        w = rnd((cout, cin, k, k), (2.0 / fan_in) ** 0.5)
        kk = k * k * cin
        kpad = _round_up(kk, 8)
        wmat = jnp.transpose(w, (2, 3, 1, 0)).reshape(kk, cout)
        if kpad != kk:
            wmat = jnp.pad(wmat, ((0, kpad - kk), (0, 0)))
        return {"w": wmat.astype(jnp.bfloat16), "k": k, "kpad": kpad}

    def bn_p(c):
        return {"g": jnp.ones((1, c), jnp.float32),
                "b": jnp.zeros((1, c), jnp.float32)}

    p = {"conv0": conv_p(NUM_INIT_FEATURES, 3, 7),
         "norm0": bn_p(NUM_INIT_FEATURES)}
    nf = NUM_INIT_FEATURES
    blocks = []
    for bi, nl in enumerate(BLOCK_CONFIG):
        layers = []
        for li in range(nl):
            cin = nf + li * GROWTH
            layers.append(dict(
                n1=bn_p(cin),
                c1=conv_p(BN_SIZE * GROWTH, cin, 1),
                n2=bn_p(BN_SIZE * GROWTH),
                c2=conv_p(GROWTH, BN_SIZE * GROWTH, 3),
            ))
        blocks.append(layers)
        nf = nf + nl * GROWTH
        if bi != len(BLOCK_CONFIG) - 1:
            p[f"trans{bi}"] = dict(n=bn_p(nf), c=conv_p(nf // 2, nf, 1))
            nf //= 2
    p["blocks"] = blocks
    p["norm5"] = bn_p(nf)                                   # nf == 2208
    p["fc_wT"] = rnd((nf, N_CLASSES), (1.0 / nf) ** 0.5).astype(jnp.bfloat16)
    p["fc_b"] = jnp.zeros((1, N_CLASSES), jnp.float32)
    return p


def _nhw(x):
    return x.shape[0] * x.shape[1] * x.shape[2]


def densenet161_forward(x_nchw, p):
    """Forward pass of the Densenet module: softmax(densenet161(x)), x NCHW."""
    x = jnp.transpose(x_nchw, (0, 2, 3, 1))                  # -> NHWC

    c0 = p["conv0"]
    h = _conv_im2col(x, None, None, c0["w"], k=7, stride=2, padding=3,
                     kpad=c0["kpad"], apply_affine=False)
    n0 = p["norm0"]
    s0, t0 = _bn_scale_shift(h, n0["g"], n0["b"], 1.0 / _nhw(h))
    h = _maxpool3x3s2_affine_relu(h, s0, t0)

    for bi, layers in enumerate(p["blocks"]):
        x_cat = h
        for lp in layers:
            s1, t1 = _bn_scale_shift(x_cat, lp["n1"]["g"], lp["n1"]["b"],
                                     1.0 / _nhw(x_cat))
            y = _conv1x1_bn_relu(x_cat, s1, t1, lp["c1"]["w"])
            s2, t2 = _bn_scale_shift(y, lp["n2"]["g"], lp["n2"]["b"],
                                     1.0 / _nhw(y))
            y = _conv_im2col(y, s2, t2, lp["c2"]["w"], k=3, stride=1, padding=1,
                             kpad=lp["c2"]["kpad"], apply_affine=True)
            # drop_rate = 0 -> no dropout.
            # TODO(synk): write y into a preallocated per-block channel slab
            # (dynamic_update_slice / input_output_aliases, or a scalar-prefetch
            # channel-offset table in the 1x1-conv index_map) instead of the
            # O(L^2) concatenation below.
            x_cat = jnp.concatenate([x_cat, y], axis=-1)
        h = x_cat
        if f"trans{bi}" in p:
            t = p[f"trans{bi}"]
            st, tt = _bn_scale_shift(h, t["n"]["g"], t["n"]["b"], 1.0 / _nhw(h))
            h = _conv1x1_bn_relu(h, st, tt, t["c"]["w"])
            h = _avgpool2x2(h)

    n5 = p["norm5"]
    s5, t5 = _bn_scale_shift(h, n5["g"], n5["b"], 1.0 / _nhw(h))
    pooled = _global_pool_affine_relu(h, s5, t5)             # (N, 2208) f32
    return _classifier_softmax(pooled, p["fc_wT"], p["fc_b"])


# ---------------------------------- main ------------------------------------
if __name__ == "__main__":
    # Small deterministic input consistent with densenet161: NCHW, 3 channels,
    # 32x32 spatial (smallest size that cleanly survives the 5 downsamplings).
    x = jax.random.normal(jax.random.PRNGKey(0), (2, 3, 32, 32),
                          dtype=jnp.float32)
    params = build_params(jax.random.PRNGKey(1))

    probs = densenet161_forward(x, params)
    probs = jax.block_until_ready(probs)

    assert probs.shape == (2, N_CLASSES)
    assert bool(jnp.all(jnp.isfinite(probs)))
    # approx-reciprocal softmax denominator -> allow a small sum tolerance
    assert bool(jnp.allclose(jnp.sum(probs, axis=1), 1.0, atol=2e-2))
    print("KERNEL_OK")
</pallas_src>

<mosaic_0001>
module attributes {stable_mosaic.version = 11 : i64} {
  func.func @_matmul_kernel(%arg0: i32, %arg1: i32, %arg2: memref<256x152xbf16, #tpu.memory_space<vmem>>, %arg3: memref<152x96xbf16, #tpu.memory_space<vmem>>, %arg4: memref<256x96xbf16, #tpu.memory_space<vmem>>) attributes {dimension_semantics = [#tpu.dimension_semantics<parallel>, #tpu.dimension_semantics<parallel>], iteration_bounds = array<i64: 2, 1>, scalar_prefetch = 0 : i64, scratch_operands = 0 : i64, tpu.core_type = #tpu.core_type<tc>, window_params = [{transform_indices = @transform_0, window_bounds = array<i64: 256, 152>}, {transform_indices = @transform_1, window_bounds = array<i64: 152, 96>}, {transform_indices = @transform_2, window_bounds = array<i64: 256, 96>}]} {
    %c0 = arith.constant 0 : index
    %c0_0 = arith.constant 0 : index
    %0 = vector.load %arg2[%c0, %c0_0] : memref<256x152xbf16, #tpu.memory_space<vmem>>, vector<256x152xbf16>
    %c0_1 = arith.constant 0 : index
    %c0_2 = arith.constant 0 : index
    %1 = vector.load %arg3[%c0_1, %c0_2] : memref<152x96xbf16, #tpu.memory_space<vmem>>, vector<152x96xbf16>
    %cst = arith.constant dense<0.000000e+00> : vector<256x96xf32>
    %2 = tpu.matmul %0, %1, %cst {dimension_numbers = #tpu.dot_dimension_numbers<[1], [0], [0], [1], [0, 0, 1, 1], [], []>} : vector<256x152xbf16>, vector<152x96xbf16>, vector<256x96xf32> -> vector<256x96xf32>
    %3 = arith.truncf %2 : vector<256x96xf32> to vector<256x96xbf16>
    %c0_3 = arith.constant 0 : index
    %c0_4 = arith.constant 0 : index
    %4 = vector.load %arg4[%c0_3, %c0_4] : memref<256x96xbf16, #tpu.memory_space<vmem>>, vector<256x96xbf16>
    tpu.vector_store %arg4[%c0_3, %c0_4], %3 {strides = array<i32>} : memref<256x96xbf16, #tpu.memory_space<vmem>>, vector<256x96xbf16>,
    return
  }
  func.func @transform_0(%arg0: i32, %arg1: i32) -> (i32, i32) {
    %c0_i32 = arith.constant 0 : i32
    %c0_i32_0 = arith.constant 0 : i32
    return %arg0, %c0_i32 : i32, i32
  }
  func.func @transform_1(%arg0: i32, %arg1: i32) -> (i32, i32) {
    %c0_i32 = arith.constant 0 : i32
    %c0_i32_0 = arith.constant 0 : i32
    return %c0_i32, %arg1 : i32, i32
  }
  func.func @transform_2(%arg0: i32, %arg1: i32) -> (i32, i32) {
    %c0_i32 = arith.constant 0 : i32
    return %arg0, %arg1 : i32, i32
  }
}

</mosaic_0001>

<bundles_post_ra>
// kernel: _conv_im2col.1
= control target key start
LH: loop header
LB: loop body
LE: loop exit
PB: predicated region body
PF: predicated region fallthrough
CT: control target
= control target key end

     0   :  { %7 = vsyncpa [#allocation3], 0  ;;  %s1548_s0 = inlined_call_operand.vmem [shape: bf16[512,152], index: 0, kind: input, shape index: {}]   ;;  %s1549_s1 = inlined_call_operand.vmem [shape: bf16[152,96], index: 1, kind: input, shape index: {}]   ;;  %s1550_s2 = inlined_call_operand.hbm [shape: bf16[512,96], index: 2, kind: output, shape index: {}]  }
   0x1   :  { %9 = vsyncpa [#allocation3 + $0x1], 0  ;;  %s1283_s9 = smov 0   ;;  %s1285_s10 = smov 0  }
   0x2   :  { %s1287_s11 = smov 0   ;;  %s1289_s12 = smov 0  }
   0x3   :  { %s1291_s13 = smov 0   ;;  %s1293_s14 = smov 0  }
   0x4 LB: > { %s909_s15 = sadd.s32 4294967295, %s1262_s14   ;;  %s910_s16 = sadd.s32 4294967294, %s1262_s14   ;;  %s1262_s14 = sphi %s1293_s14, %s15_s14   ;;  %s1258_s13 = sphi %s1291_s13, %s1557_s13   ;;  %s1254_s12 = sphi %s1289_s12, %s1556_s12   ;;  %s1250_s11 = sphi %s1287_s11, %s1555_s11   ;;  %s1246_s10 = sphi %s1285_s10, %s1554_s10   ;;  %s1242_s9 = sphi %s1283_s9, %s1553_s9  }
   0x5   : > { %s27_s17 = sadd.s32 1, %s1258_s13  ;;  %s88_s18 = sadd.s32 1, %s1250_s11 }
   0x6   : > { %p29_p0 = scmp.ge.s32.totalorder %s27_s17, 2  ;;  %p98_p1 = scmp.ne.s32.totalorder %s1250_s11, %s1246_s10 }
   0x7   : > { %p99_p2 = scmp.eq.s32.totalorder %s909_s15, 1  ;;  %p104_p3 = scmp.ne.s32.totalorder %s1246_s10, %s1242_s9 }
   0x8   : > { %s1559_s17 = smov (%p29_p0, %s27_s17), 0  ;;  %p105_p5 = scmp.eq.s32.totalorder %s910_s16, 1 }
   0x9   : > { %p1323_p4 = por %p99_p2, %p98_p1  ;;  %s83_s20 = ssub.s32 %s1258_s13, %s1559_s17 }
   0xa   : > { %p914_p6 = scmp.ge.s32.totalorder %s1262_s14, 1  ;;  %p86_p7 = scmp.eq.s32.totalorder %s83_s20, 0 }
   0xb   : > { %p1330_p8 = por %p105_p5, %p104_p3  ;;  %p140_p9 = scmp.lt.s32.totalorder %s1262_s14, 3 }
   0xc   : > { %s1336_s22 = scalar_select %p86_p7, %s1250_s11, %s88_s18  }
   0xd   : > { %p141_p10 = pnand %p914_p6, %p140_p9 }
   0xe   : > { %v1126_v0 = vld [vmem:[%s1549_s1] sm:$0xff] (!%p141_p10)   ;;  %v1264_v1 = vmov (!%p141_p10), 0   ;;  %v1127_v2 = vld [vmem:[%s1549_s1 + $0x8] sm:$0xff] (!%p141_p10)   ;;  %s916_s27 = sshll.u32 (!%p141_p10), %s1254_s12, 5  ;;  %v1128_v3 = vld [vmem:[%s1549_s1 + $0x10] sm:$0xff] (!%p141_p10)   ;;  %vm432_vm0 = vcmask (!%p141_p10), 195584  }
   0xf   : > { %144 = sbr.rel (%p141_p10) target bundleno = 342 (0x156), region = 28  ;;  %485 = vmatprep.subr.bf16.mxu0 (!%p141_p10), %v1264_v1  ;;  %1048 = vmatprep.subr.bf16.mxu1 (!%p141_p10), %v1264_v1  ;;  %p168_p11 = scmp.lt.s32.totalorder (!%p141_p10), %s916_s27, 63  ;;  %v1129_v4 = vld [vmem:[%s1549_s1 + $0x18] sm:$0xff] (!%p141_p10)   ;;  %v1130_v7 = vld [vmem:[%s1549_s1 + $0x20] sm:$0xff] (!%p141_p10)   ;;  %v1131_v8 = vld [vmem:[%s1549_s1 + $0x28] sm:$0xff] (!%p141_p10)   ;;  %vm481_vm1 = vcmask (!%p141_p10), 1043456  }
  0x10   : > { %486 = vmatpush1.bf16.msra.mxu0 (!%p141_p10), %v1126_v0  ;;  %1058 = vmatpush1.bf16.msra.mxu1 (!%p141_p10), %v1126_v0  ;;  %v1132_v9 = vld [vmem:[%s1549_s1 + $0x30] sm:$0xff] (!%p141_p10)   ;;  %v1133_v10 = vld [vmem:[%s1549_s1 + $0x38] sm:$0xff] (!%p141_p10)   ;;  %v1134_v11 = vld [vmem:[%s1549_s1 + $0x40] sm:$0xff] (!%p141_p10)   ;;  %vm774_vm2 = vcmask (!%p141_p10), 781312   ;;  %s1265_s18 = smov (!%p141_p10), [#allocation2]  }
  0x11   : > { %487 = vmatprep.subr.bf16.mxu0 (!%p141_p10), %v1264_v1  ;;  %1049 = vmatprep.subr.bf16.mxu1 (!%p141_p10), %v1264_v1  ;;  %v1135_v12 = vld [vmem:[%s1549_s1 + $0x48] ss:$0 sps:$4 sm:$0xff] (!%p141_p10)   ;;  %s1188_s20 = sshll.u32 (!%p141_p10), %s1265_s18, 4  ;;  %s1189_s20 = int_to_ptr.vmem [resolvable:$false] %s1188_s20 }
  0x12   : > { %v483_v13 = vsel (!%p141_p10), %vm481_vm1, %v1135_v12, 0  ;;  %s1190_s23 = scalar_lea.vmem (!%p141_p10), %s1189_s20, 4096 }
  0x14   : > { %488 = vmatpush1.bf16.msra.mxu0 (!%p141_p10), %v1127_v2  ;;  %1059 = vmatpush1.bf16.msra.mxu1 (!%p141_p10), %v1127_v2 }
  0x15   : > { %489 = vmatprep.subr.bf16.mxu0 (!%p141_p10), %v1264_v1  ;;  %1050 = vmatprep.subr.bf16.mxu1 (!%p141_p10), %v1264_v1 }
  0x16   : > { %s1561_s27 = smov (!%p168_p11, %s916_s27), 63 }
  0x17   : > { %s1014_s30 = sshll.u32 %s1561_s27, 3 }
  0x18   : > { %s1351_s5 = scalar_lea.vmem %s1548_s0, %s1014_s30  ;;  %490 = vmatpush1.bf16.msra.mxu0 %v1128_v3  ;;  %1060 = vmatpush1.bf16.msra.mxu1 %v1128_v3  ;;  %s164_s30 = sand.u32 1, %s1246_s10  }
  0x19   : > { %v1138_v5 = vld [vmem:[%s1351_s5 + $0x4] ss:$8 sps:$4 sm:$0xff]   ;;  %491 = vmatprep.subr.bf16.mxu0 %v1264_v1  ;;  %1051 = vmatprep.subr.bf16.mxu1 %v1264_v1  ;;  %v1136_v14 = vld [vmem:[%s1351_s5] ss:$8 sps:$4 sm:$0xff]   ;;  %v1142_v16 = vld [vmem:[%s1351_s5 + $0x14] ss:$8 sps:$4 sm:$0xff]  }
  0x1a   : > { %961 = vmatprep.mubr.msk.bf16.mxu0 %vm432_vm0, %v1138_v5  ;;  %v1141_v6 = vld [vmem:[%s1351_s5 + $0x84] ss:$8 sps:$4 sm:$0xff]   ;;  %v1139_v15 = vld [vmem:[%s1351_s5 + $0x80] ss:$8 sps:$4 sm:$0xff]   ;;  %v1144_v17 = vld [vmem:[%s1351_s5 + $0x94] ss:$8 sps:$4 sm:$0xff]  }
  0x1b   : > { %969 = vmatprep.mubr.msk.bf16.mxu1 %vm432_vm0, %v1141_v6  ;;  %v1146_v18 = vld [vmem:[%s1351_s5 + $0x10] ss:$8 sps:$4 sm:$0xff]   ;;  %v1148_v20 = vld [vmem:[%s1351_s5 + $0x24] ss:$8 sps:$4 sm:$0xff]   ;;  %v1152_v22 = vld [vmem:[%s1351_s5 + $0x20] ss:$8 sps:$4 sm:$0xff]  }
  0x1c   : > { %492 = vmatpush1.bf16.msra.mxu0 %v1129_v4  ;;  %1061 = vmatpush1.bf16.msra.mxu1 %v1129_v4  ;;  %v1147_v19 = vld [vmem:[%s1351_s5 + $0x90] ss:$8 sps:$4 sm:$0xff]   ;;  %v1150_v21 = vld [vmem:[%s1351_s5 + $0xa4] ss:$8 sps:$4 sm:$0xff]   ;;  %v1153_v23 = vld [vmem:[%s1351_s5 + $0xa0] ss:$8 sps:$4 sm:$0xff]  }
  0x1d   : > { %493 = vmatprep.subr.bf16.mxu0 %v1264_v1  ;;  %1052 = vmatprep.subr.bf16.mxu1 %v1264_v1  ;;  %v1154_v24 = vld [vmem:[%s1351_s5 + $0x34] ss:$8 sps:$4 sm:$0xff]   ;;  %v1158_v26 = vld [vmem:[%s1351_s5 + $0x30] ss:$8 sps:$4 sm:$0xff]   ;;  %v1160_v28 = vld [vmem:[%s1351_s5 + $0x44] ss:$8 sps:$4 sm:$0xff]  }
  0x1e   : > { %v1156_v25 = vld [vmem:[%s1351_s5 + $0xb4] ss:$8 sps:$4 sm:$0xff]   ;;  %v1159_v27 = vld [vmem:[%s1351_s5 + $0xb0] ss:$8 sps:$4 sm:$0xff]   ;;  %v1162_v29 = vld [vmem:[%s1351_s5 + $0xc4] ss:$8 sps:$4 sm:$0xff]  }
  0x1f   : > { %v1164_v30 = vld [vmem:[%s1351_s5 + $0x40] ss:$8 sps:$4 sm:$0xff]   ;;  %v1166_v32 = vld [vmem:[%s1351_s5 + $0x54] ss:$8 sps:$4 sm:$0xff]   ;;  %v1170_v34 = vld [vmem:[%s1351_s5 + $0x50] ss:$8 sps:$4 sm:$0xff]  }
  0x20   : > { %494 = vmatpush1.bf16.msra.mxu0 %v1130_v7  ;;  %1062 = vmatpush1.bf16.msra.mxu1 %v1130_v7  ;;  %v1165_v31 = vld [vmem:[%s1351_s5 + $0xc0] ss:$8 sps:$4 sm:$0xff]   ;;  %v1168_v33 = vld [vmem:[%s1351_s5 + $0xd4] ss:$8 sps:$4 sm:$0xff]   ;;  %v1171_v35 = vld [vmem:[%s1351_s5 + $0xd0] ss:$8 sps:$4 sm:$0xff]  }
  0x21   : > { %495 = vmatprep.subr.bf16.mxu0 %v1264_v1  ;;  %1053 = vmatprep.subr.bf16.mxu1 %v1264_v1  ;;  %v1172_v36 = vld [vmem:[%s1351_s5 + $0x64] ss:$8 sps:$4 sm:$0xff]   ;;  %v1176_v38 = vld [vmem:[%s1351_s5 + $0x60] ss:$8 sps:$4 sm:$0xff]   ;;  %v1178_v40 = vld [vmem:[%s1351_s5 + $0x74] ss:$8 sps:$4 sm:$0xff]  }
  0x22   : > { %v1174_v37 = vld [vmem:[%s1351_s5 + $0xe4] ss:$8 sps:$4 sm:$0xff]   ;;  %v1177_v39 = vld [vmem:[%s1351_s5 + $0xe0] ss:$8 sps:$4 sm:$0xff]   ;;  %v1180_v41 = vld [vmem:[%s1351_s5 + $0xf4] ss:$8 sps:$4 sm:$0xff]  }
  0x23   : > { %v1182_v42 = vld [vmem:[%s1351_s5 + $0x70] ss:$8 sps:$4 sm:$0xff]   ;;  %s915_s3 = sshll.u32 %s164_s30, 7 }
  0x24   : > { %496 = vmatpush1.bf16.msra.mxu0 %v1131_v8  ;;  %1063 = vmatpush1.bf16.msra.mxu1 %v1131_v8  ;;  %v1183_v43 = vld [vmem:[%s1351_s5 + $0xf0] ss:$8 sps:$4 sm:$0xff]   ;;  %s1425_s4 = scalar_lea.vmem [#allocation2], %s915_s3  ;;  %s1047_s5 = sshll.u32 %s1254_s12, 11 }
  0x25   : > { %497 = vmatprep.subr.bf16.mxu0 %v1264_v1  ;;  %1054 = vmatprep.subr.bf16.mxu1 %v1264_v1  ;;  %s822_s6 = sshll.u32 %s1425_s4, 4  ;;  %s1488_s15 = scalar_lea.hbm %s1550_s2, %s1047_s5  ;;  %s1490_s6 = int_to_ptr.vmem [resolvable:$true] %s822_s6 }
  0x26   : > { %s1502_s12 = scalar_lea.sflag [#allocation3], %s164_s30  ;;  %s1184_s16 = scalar_lea.vmem %s1490_s6, 2048 }
  0x27   : > { %p1185_p12 = scmp.ne.s32.totalorder %s1490_s6, %s1184_s16  ;;  %p1191_p1 = scmp.lt.s32.totalorder %s1490_s6, %s1189_s20 }
  0x28   : > { %498 = vmatpush1.bf16.msra.mxu0 %v1132_v9  ;;  %1064 = vmatpush1.bf16.msra.mxu1 %v1132_v9  ;;  %p1192_p2 = scmp.lt.s32.totalorder %s1190_s23, %s1184_s16 }
  0x29   : > { %499 = vmatprep.subr.bf16.mxu0 %v1264_v1  ;;  %1055 = vmatprep.subr.bf16.mxu1 %v1264_v1  ;;  %p1186_p13 = pnand %p1185_p12, %p1323_p4 }
  0x2a   : > { %p1193_p3 = por %p1192_p2, %p1191_p1 }
  0x2b   : > { %p1187_p0 = pneg %p1186_p13 }
  0x2c   : > { %500 = vmatpush1.bf16.msra.mxu0 %v1133_v10  ;;  %1065 = vmatpush1.bf16.msra.mxu1 %v1133_v10 }
  0x2d   : > { %501 = vmatprep.subr.bf16.mxu0 %v1264_v1  ;;  %1056 = vmatprep.subr.bf16.mxu1 %v1264_v1  ;;  %p1194_p5 = pnand %p1193_p3, %p1187_p0 }
  0x30   : > { %502 = vmatpush1.bf16.msra.mxu0 %v1134_v11  ;;  %1066 = vmatpush1.bf16.msra.mxu1 %v1134_v11 }
  0x31   : > { %503 = vmatprep.subr.bf16.mxu0 %v1264_v1  ;;  %1057 = vmatprep.subr.bf16.mxu1 %v1264_v1 }
  0x34   : > { %504 = vmatpush1.bf16.msra.mxu0 %v483_v13  ;;  %1067 = vmatpush1.bf16.msra.mxu1 %v483_v13 }
  0x37   : > { %518 = vmatmul.mubr.bf16.vlgmr.msra.gmra.mrb[0].mxu0 %v1136_v14  ;;  %582 = vmatmul.mubr.bf16.vlgmr.msra.gmra.mrb[0].mxu1 %v1139_v15 }
  0x38   : > { %962 = vmatprep.mubr.msk.bf16.mxu0 %vm432_vm0, %v1142_v16  ;;  %970 = vmatprep.mubr.msk.bf16.mxu1 %vm432_vm0, %v1144_v17 }
  0x3f   : > { %526 = vmatmul.mubr.bf16.gmra.mrb[4].mxu0 %v1146_v18  ;;  %590 = vmatmul.mubr.bf16.gmra.mrb[4].mxu1 %v1147_v19 }
  0x40   : > { %963 = vmatprep.mubr.msk.bf16.mxu0 %vm432_vm0, %v1148_v20  ;;  %971 = vmatprep.mubr.msk.bf16.mxu1 %vm432_vm0, %v1150_v21 }
  0x47   : > { %534 = vmatmul.mubr.bf16.gmra.mrb[8].mxu0 %v1152_v22  ;;  %598 = vmatmul.mubr.bf16.gmra.mrb[8].mxu1 %v1153_v23 }
  0x48   : > { %964 = vmatprep.mubr.msk.bf16.mxu0 %vm432_vm0, %v1154_v24  ;;  %972 = vmatprep.mubr.msk.bf16.mxu1 %vm432_vm0, %v1156_v25 }
  0x4f   : > { %542 = vmatmul.mubr.bf16.gmra.mrb[12].mxu0 %v1158_v26  ;;  %606 = vmatmul.mubr.bf16.gmra.mrb[12].mxu1 %v1159_v27 }
  0x50   : > { %965 = vmatprep.mubr.msk.bf16.mxu0 %vm432_vm0, %v1160_v28  ;;  %973 = vmatprep.mubr.msk.bf16.mxu1 %vm432_vm0, %v1162_v29 }
  0x57   : > { %550 = vmatmul.mubr.bf16.gmra.mrb[16].mxu0 %v1164_v30  ;;  %614 = vmatmul.mubr.bf16.gmra.mrb[16].mxu1 %v1165_v31 }
  0x58   : > { %966 = vmatprep.mubr.msk.bf16.mxu0 %vm432_vm0, %v1166_v32  ;;  %974 = vmatprep.mubr.msk.bf16.mxu1 %vm432_vm0, %v1168_v33 }
  0x5f   : > { %558 = vmatmul.mubr.bf16.gmra.mrb[20].mxu0 %v1170_v34  ;;  %622 = vmatmul.mubr.bf16.gmra.mrb[20].mxu1 %v1171_v35 }
  0x60   : > { %967 = vmatprep.mubr.msk.bf16.mxu0 %vm432_vm0, %v1172_v36  ;;  %975 = vmatprep.mubr.msk.bf16.mxu1 %vm432_vm0, %v1174_v37 }
  0x67   : > { %566 = vmatmul.mubr.bf16.gmra.mrb[24].mxu0 %v1176_v38  ;;  %630 = vmatmul.mubr.bf16.gmra.mrb[24].mxu1 %v1177_v39 }
  0x68   : > { %968 = vmatprep.mubr.msk.bf16.mxu0 %vm432_vm0, %v1178_v40  ;;  %976 = vmatprep.mubr.msk.bf16.mxu1 %vm432_vm0, %v1180_v41 }
  0x6f   : > { %574 = vmatmul.mubr.bf16.gmra.mrb[28].mxu0 %v1182_v42  ;;  %638 = vmatmul.mubr.bf16.gmra.mrb[28].mxu1 %v1183_v43 }
 0x10a   : > { %v519_v44 = vpop.f32.mrb[0].mxu0  ;;  %v583_v45 = vpop.f32.mrb[0].mxu1 }
 0x10b   : > { %v1015_v46 = vpack.c.bf16 %v519_v44, %v519_v44  ;;  %v1031_v47 = vpack.c.bf16 %v583_v45, %v583_v45  ;;  %v521_v48 = vpop.f32.mrb[1].mxu0  ;;  %v585_v49 = vpop.f32.mrb[1].mxu1 }
 0x10c   : > { %v522_v50 = vpop.f32.mrb[2].mxu0  ;;  %v586_v51 = vpop.f32.mrb[2].mxu1 }
 0x10d   : > { %775 = vst.msk [vmem:[%s1425_s4] sm:$0xf] %vm774_vm2, %v1015_v46  ;;  %791 = vst.msk [vmem:[%s1425_s4 + $0x40] sm:$0xf] %vm774_vm2, %v1031_v47  ;;  %v1016_v52 = vpack.c.bf16 %v522_v50, %v522_v50  ;;  %v1032_v53 = vpack.c.bf16 %v586_v51, %v586_v51  ;;  %v524_v54 = vpop.f32.mrb[3].mxu0  ;;  %v588_v55 = vpop.f32.mrb[3].mxu1 }
 0x10f   : > { %776 = vst.msk [vmem:[%s1425_s4 + $0x4] sm:$0xf] %vm774_vm2, %v1016_v52  ;;  %792 = vst.msk [vmem:[%s1425_s4 + $0x44] sm:$0xf] %vm774_vm2, %v1032_v53 }
 0x112   : > { %v527_v56 = vpop.f32.mrb[4].mxu0  ;;  %v591_v57 = vpop.f32.mrb[4].mxu1 }
 0x113   : > { %v1017_v58 = vpack.c.bf16 %v527_v56, %v527_v56  ;;  %v1033_v59 = vpack.c.bf16 %v591_v57, %v591_v57  ;;  %v529_v60 = vpop.f32.mrb[5].mxu0  ;;  %v593_v61 = vpop.f32.mrb[5].mxu1 }
 0x114   : > { %v530_v62 = vpop.f32.mrb[6].mxu0  ;;  %v594_v63 = vpop.f32.mrb[6].mxu1 }
 0x115   : > { %777 = vst.msk [vmem:[%s1425_s4 + $0x8] sm:$0xf] %vm774_vm2, %v1017_v58  ;;  %793 = vst.msk [vmem:[%s1425_s4 + $0x48] sm:$0xf] %vm774_vm2, %v1033_v59  ;;  %v1018_v0 = vpack.c.bf16 %v530_v62, %v530_v62  ;;  %v1034_v1 = vpack.c.bf16 %v594_v63, %v594_v63  ;;  %v532_v2 = vpop.f32.mrb[7].mxu0  ;;  %v596_v3 = vpop.f32.mrb[7].mxu1 }
 0x117   : > { %778 = vst.msk [vmem:[%s1425_s4 + $0xc] sm:$0xf] %vm774_vm2, %v1018_v0  ;;  %794 = vst.msk [vmem:[%s1425_s4 + $0x4c] sm:$0xf] %vm774_vm2, %v1034_v1 }
 0x11a   : > { %v535_v4 = vpop.f32.mrb[8].mxu0  ;;  %v599_v5 = vpop.f32.mrb[8].mxu1 }
 0x11b   : > { %v1019_v6 = vpack.c.bf16 %v535_v4, %v535_v4  ;;  %v1035_v7 = vpack.c.bf16 %v599_v5, %v599_v5  ;;  %v537_v8 = vpop.f32.mrb[9].mxu0  ;;  %v601_v9 = vpop.f32.mrb[9].mxu1 }
 0x11c   : > { %v538_v10 = vpop.f32.mrb[10].mxu0  ;;  %v602_v11 = vpop.f32.mrb[10].mxu1 }
 0x11d   : > { %779 = vst.msk [vmem:[%s1425_s4 + $0x10] sm:$0xf] %vm774_vm2, %v1019_v6  ;;  %795 = vst.msk [vmem:[%s1425_s4 + $0x50] sm:$0xf] %vm774_vm2, %v1035_v7  ;;  %v1020_v12 = vpack.c.bf16 %v538_v10, %v538_v10  ;;  %v1036_v13 = vpack.c.bf16 %v602_v11, %v602_v11  ;;  %v540_v14 = vpop.f32.mrb[11].mxu0  ;;  %v604_v15 = vpop.f32.mrb[11].mxu1 }
 0x11f   : > { %780 = vst.msk [vmem:[%s1425_s4 + $0x14] sm:$0xf] %vm774_vm2, %v1020_v12  ;;  %796 = vst.msk [vmem:[%s1425_s4 + $0x54] sm:$0xf] %vm774_vm2, %v1036_v13 }
 0x122   : > { %v543_v16 = vpop.f32.mrb[12].mxu0  ;;  %v607_v17 = vpop.f32.mrb[12].mxu1 }
 0x123   : > { %v1021_v18 = vpack.c.bf16 %v543_v16, %v543_v16  ;;  %v1037_v19 = vpack.c.bf16 %v607_v17, %v607_v17  ;;  %v545_v20 = vpop.f32.mrb[13].mxu0  ;;  %v609_v21 = vpop.f32.mrb[13].mxu1 }
 0x124   : > { %v546_v22 = vpop.f32.mrb[14].mxu0  ;;  %v610_v23 = vpop.f32.mrb[14].mxu1 }
 0x125   : > { %781 = vst.msk [vmem:[%s1425_s4 + $0x18] sm:$0xf] %vm774_vm2, %v1021_v18  ;;  %797 = vst.msk [vmem:[%s1425_s4 + $0x58] sm:$0xf] %vm774_vm2, %v1037_v19  ;;  %v1022_v24 = vpack.c.bf16 %v546_v22, %v546_v22  ;;  %v1038_v25 = vpack.c.bf16 %v610_v23, %v610_v23  ;;  %v548_v26 = vpop.f32.mrb[15].mxu0  ;;  %v612_v27 = vpop.f32.mrb[15].mxu1 }
 0x127   : > { %782 = vst.msk [vmem:[%s1425_s4 + $0x1c] sm:$0xf] %vm774_vm2, %v1022_v24  ;;  %798 = vst.msk [vmem:[%s1425_s4 + $0x5c] sm:$0xf] %vm774_vm2, %v1038_v25 }
 0x12a   : > { %v551_v28 = vpop.f32.mrb[16].mxu0  ;;  %v615_v29 = vpop.f32.mrb[16].mxu1 }
 0x12b   : > { %v1023_v30 = vpack.c.bf16 %v551_v28, %v551_v28  ;;  %v1039_v31 = vpack.c.bf16 %v615_v29, %v615_v29  ;;  %v553_v32 = vpop.f32.mrb[17].mxu0  ;;  %v617_v33 = vpop.f32.mrb[17].mxu1 }
 0x12c   : > { %v554_v34 = vpop.f32.mrb[18].mxu0  ;;  %v618_v35 = vpop.f32.mrb[18].mxu1 }
 0x12d   : > { %783 = vst.msk [vmem:[%s1425_s4 + $0x20] sm:$0xf] %vm774_vm2, %v1023_v30  ;;  %799 = vst.msk [vmem:[%s1425_s4 + $0x60] sm:$0xf] %vm774_vm2, %v1039_v31  ;;  %v1024_v36 = vpack.c.bf16 %v554_v34, %v554_v34  ;;  %v1040_v37 = vpack.c.bf16 %v618_v35, %v618_v35  ;;  %v556_v38 = vpop.f32.mrb[19].mxu0  ;;  %v620_v39 = vpop.f32.mrb[19].mxu1 }
 0x12f   : > { %784 = vst.msk [vmem:[%s1425_s4 + $0x24] sm:$0xf] %vm774_vm2, %v1024_v36  ;;  %800 = vst.msk [vmem:[%s1425_s4 + $0x64] sm:$0xf] %vm774_vm2, %v1040_v37 }
 0x132   : > { %v559_v40 = vpop.f32.mrb[20].mxu0  ;;  %v623_v41 = vpop.f32.mrb[20].mxu1 }
 0x133   : > { %v1025_v42 = vpack.c.bf16 %v559_v40, %v559_v40  ;;  %v1041_v43 = vpack.c.bf16 %v623_v41, %v623_v41  ;;  %v561_v44 = vpop.f32.mrb[21].mxu0  ;;  %v625_v45 = vpop.f32.mrb[21].mxu1 }
 0x134   : > { %v562_v46 = vpop.f32.mrb[22].mxu0  ;;  %v626_v47 = vpop.f32.mrb[22].mxu1 }
 0x135   : > { %785 = vst.msk [vmem:[%s1425_s4 + $0x28] sm:$0xf] %vm774_vm2, %v1025_v42  ;;  %801 = vst.msk [vmem:[%s1425_s4 + $0x68] sm:$0xf] %vm774_vm2, %v1041_v43  ;;  %v1026_v48 = vpack.c.bf16 %v562_v46, %v562_v46  ;;  %v1042_v49 = vpack.c.bf16 %v626_v47, %v626_v47  ;;  %v564_v50 = vpop.f32.mrb[23].mxu0  ;;  %v628_v51 = vpop.f32.mrb[23].mxu1 }
 0x137   : > { %786 = vst.msk [vmem:[%s1425_s4 + $0x2c] sm:$0xf] %vm774_vm2, %v1026_v48  ;;  %802 = vst.msk [vmem:[%s1425_s4 + $0x6c] sm:$0xf] %vm774_vm2, %v1042_v49 }
 0x13a   : > { %v567_v52 = vpop.f32.mrb[24].mxu0  ;;  %v631_v53 = vpop.f32.mrb[24].mxu1 }
 0x13b   : > { %v1027_v54 = vpack.c.bf16 %v567_v52, %v567_v52  ;;  %v1043_v55 = vpack.c.bf16 %v631_v53, %v631_v53  ;;  %v569_v56 = vpop.f32.mrb[25].mxu0  ;;  %v633_v57 = vpop.f32.mrb[25].mxu1 }
 0x13c   : > { %v570_v58 = vpop.f32.mrb[26].mxu0  ;;  %v634_v59 = vpop.f32.mrb[26].mxu1 }
 0x13d   : > { %787 = vst.msk [vmem:[%s1425_s4 + $0x30] sm:$0xf] %vm774_vm2, %v1027_v54  ;;  %803 = vst.msk [vmem:[%s1425_s4 + $0x70] sm:$0xf] %vm774_vm2, %v1043_v55  ;;  %v1028_v60 = vpack.c.bf16 %v570_v58, %v570_v58  ;;  %v1044_v61 = vpack.c.bf16 %v634_v59, %v634_v59  ;;  %v572_v62 = vpop.f32.mrb[27].mxu0  ;;  %v636_v63 = vpop.f32.mrb[27].mxu1 }
 0x13f   : > { %788 = vst.msk [vmem:[%s1425_s4 + $0x34] sm:$0xf] %vm774_vm2, %v1028_v60  ;;  %804 = vst.msk [vmem:[%s1425_s4 + $0x74] sm:$0xf] %vm774_vm2, %v1044_v61 }
 0x142   : > { %v575_v0 = vpop.f32.mrb[28].mxu0  ;;  %v639_v1 = vpop.f32.mrb[28].mxu1 }
 0x143   : > { %v1029_v2 = vpack.c.bf16 %v575_v0, %v575_v0  ;;  %v1045_v3 = vpack.c.bf16 %v639_v1, %v639_v1  ;;  %v577_v4 = vpop.f32.mrb[29].mxu0  ;;  %v641_v5 = vpop.f32.mrb[29].mxu1 }
 0x144   : > { %v578_v6 = vpop.f32.mrb[30].mxu0  ;;  %v642_v7 = vpop.f32.mrb[30].mxu1 }
 0x145   : > { %789 = vst.msk [vmem:[%s1425_s4 + $0x38] sm:$0xf] %vm774_vm2, %v1029_v2  ;;  %805 = vst.msk [vmem:[%s1425_s4 + $0x78] sm:$0xf] %vm774_vm2, %v1045_v3  ;;  %v1030_v8 = vpack.c.bf16 %v578_v6, %v578_v6  ;;  %v1046_v9 = vpack.c.bf16 %v642_v7, %v642_v7  ;;  %v580_v10 = vpop.f32.mrb[31].mxu0  ;;  %v644_v11 = vpop.f32.mrb[31].mxu1 }
 0x147   : > { %790 = vst.msk [vmem:[%s1425_s4 + $0x3c] sm:$0xf] %vm774_vm2, %v1030_v8  ;;  %806 = vst.msk [vmem:[%s1425_s4 + $0x7c] sm:$0xf] %vm774_vm2, %v1046_v9 }
 0x148   : > { %1197 = shalt.err (!%p1194_p5)
}
 0x149   : > { %s1198_s24 = scalar_lea.hbm %s1488_s15, 2048  ;;  %s1202_s27 = scalar_lea.hbm %s1550_s2, 4096 }
 0x14a   : > { %p1199_p6 = scmp.ne.s32.totalorder %s1488_s15, %s1198_s24  ;;  %p1203_p10 = scmp.lt.u32.totalorder %s1488_s15, %s1550_s2 }
 0x14b   : > { %p1204_p11 = scmp.lt.u32.totalorder %s1202_s27, %s1198_s24  ;;  %p1206_p13 = scmp.lt.u32.totalorder %s1198_s24, %s1488_s15 }
 0x14c   : > { %p1200_p7 = pnand %p1199_p6, %p1323_p4 }
 0x14d   : > { %p1205_p12 = por %p1204_p11, %p1203_p10 }
 0x14e   : > { %p1201_p9 = pneg %p1200_p7 }
 0x14f   : > { %p1207_p0 = por %p1206_p13, %p1205_p12 }
 0x151   : > { %p1208_p1 = pnand %p1207_p0, %p1201_p9 }
 0x153   : > { %1211 = shalt.err (!%p1208_p1)
}
 0x154   : > { %s1266_s30 = smov 64   ;;  %s1267_s3 = smov 4  }
 0x155   : > { %1068 = dma.vmem_to_hbm [thread:$0]  (%p1323_p4), %s1490_s6, 2048, %s1488_s15, %s1502_s12, %s1266_s30, %s1266_s30, %s1267_s3  }
 0x156 PF: > { %p1074_p2 = scmp.ge.s32.totalorder %s1262_s14, 2  ;;  %s837_s4 = sand.u32 1, %s1242_s9  }
 0x157   : > { %s838_s5 = scalar_lea.sflag [#allocation3], %s837_s4 }
 0x158   : > { %p1071_p3 = pnand %p1074_p2, %p1330_p8 }
 0x15a   : > { %1237 = dma.done.wait (!%p1071_p3), %s838_s5, 2048  }
 0x15b   : > { %1239 = vsyncadd (!%p1071_p3), %s838_s5, 4294965248  ;;  %s15_s14 = sadd.s32 1, %s1262_s14   ;;  %s1553_s9 = smov %s1246_s10 }
 0x15c   : > { %p12_p5 = scmp.ge.s32.totalorder %s15_s14, 4   ;;  %s1554_s10 = smov %s1250_s11 }
 0x15d   : > { %s1555_s11 = smov %s1336_s22  ;;  %s1556_s12 = smov %s1258_s13 }
 0x15e   : > { %s1557_s13 = smov %s1559_s17  ;;  %14 = sbr.rel (!%p12_p5) target bundleno = 4 (0x4), region = 66 }
 0x165   :  { %843 = vsyncpa [#allocation3], 1 }
 0x166   :  { %845 = vsyncpa [#allocation3 + $0x1], 1 }

</bundles_post_ra>
